<compile_context>
chip_gen: v6e
topology: v6e:2x2x1
jax: 0.10.0
libtpu: 0.0.40
codegen_flags: <defaults>
</compile_context>

<pallas_src>
import jax
import jax.numpy as jnp
from jax.experimental import pallas as pl
from jax.experimental.pallas import tpu as pltpu

_F_IN, _H1, _H2, _F_OUT = 2, 10, 50, 2
_CHUNK = 512  # lanes per inner slab: h2 [51, 512] ~ 28 vregs -> stays in registers


def _round_up(a, b):
    return ((a + b - 1) // b) * b


def _cdiv(a, b):
    return (a + b - 1) // b


def _choose_tile(n, max_tile_n):
    """Pick (tile, n_pad, grid) with bounded padding waste (<128 rows/tile) and
    BlockSpec-legal blocks (tile == n for a single block, else tile % 128 == 0)."""
    cap = max(128, max_tile_n)
    if n <= cap:
        return n, n, 1                         # one exact block, zero padding
    grid = _cdiv(n, cap)
    tile = _round_up(_cdiv(n, grid), 128)      # balanced tiles, 128-lane granularity
    return tile, tile * grid, grid


def _pack_params(p):
    """Fold biases into the weight matrices via the ones-row trick.

    h1_ext = relu(w1e @ x^T + b1e)  -> row 10 == relu(0 + 1) == 1
    h2_ext = relu(w2e @ h1_ext)     -> rows 0..49 get b2 via the ones row,
                                        row 50 == 1
    out    = w3e @ h2_ext           -> b3 via the ones row
    All arrays are tiny; for repeated inference this can be hoisted/jitted.
    """
    f32 = jnp.float32
    w1, b1 = p["w1"].astype(f32), p["b1"].reshape(_H1, 1).astype(f32)
    w2, b2 = p["w2"].astype(f32), p["b2"].reshape(_H2, 1).astype(f32)
    w3, b3 = p["w3"].astype(f32), p["b3"].reshape(_F_OUT, 1).astype(f32)

    w1e = jnp.concatenate([w1, jnp.zeros((1, _F_IN), f32)], axis=0)          # [11, 2]
    b1e = jnp.concatenate([b1, jnp.ones((1, 1), f32)], axis=0)               # [11, 1]

    top = jnp.concatenate([w2, b2], axis=1)                                  # [50, 11]
    bot = jnp.concatenate([jnp.zeros((1, _H1), f32), jnp.ones((1, 1), f32)], axis=1)
    w2e = jnp.concatenate([top, bot], axis=0)                                # [51, 11]

    w3e = jnp.concatenate([w3, b3], axis=1)                                  # [2, 51]
    return w1e, b1e, w2e, w3e


def _make_kernel(tile):
    n_full, rem = divmod(tile, _CHUNK)

    def kernel(x_ref, w1e_ref, b1e_ref, w2e_ref, w3e_ref, o_ref):
        w1e = w1e_ref[...]      # [11, 2]
        b1e = b1e_ref[...]      # [11, 1]
        w2e = w2e_ref[...]      # [51, 11]
        w3e = w3e_ref[...]      # [2, 51]

        def do_chunk(i0, width):
            # [width, 2] batch-major slab -> [2, width] feature-major.  The
            # transpose rides on the XLU (idle here) instead of a wrapper-side
            # XLA pass; everything downstream is lane-dense.
            xt = jnp.transpose(x_ref[pl.ds(i0, width), :])                   # [2, width]
            # Layer 1 (+bias).  Row 10 of h1 becomes the constant-1 bias lane.
            h1 = jnp.maximum(
                jnp.dot(w1e, xt, preferred_element_type=jnp.float32) + b1e, 0.0)
            # Layer 2: bias fused via the ones row; row 50 is the next bias lane.
            h2 = jnp.maximum(
                jnp.dot(w2e, h1, preferred_element_type=jnp.float32), 0.0)   # [51, width]
            # Layer 3: bias fused.  Output stays lane-dense [2, width].
            out = jnp.dot(w3e, h2, preferred_element_type=jnp.float32)
            o_ref[:, pl.ds(i0, width)] = out.astype(o_ref.dtype)

        # Static unroll (<= tile/_CHUNK + 1 slabs): slice offsets stay static and
        # h1/h2 stay vreg-resident instead of full-tile VMEM scratch.
        for c in range(n_full):
            do_chunk(c * _CHUNK, _CHUNK)
        if rem:
            do_chunk(n_full * _CHUNK, rem)

    return kernel


def generator_forward(x, params, *, max_tile_n=8192, feature_major_output=False):
    """Forward pass of `generator`.

    x: [N, 2] float32 (PyTorch layout).  Returns [N, 2] by default, or the
    kernel's native lane-dense [2, N] if feature_major_output=True (skips the
    final interface-only layout transpose for perf-sensitive consumers).
    """
    x = jnp.asarray(x, jnp.float32)
    n = x.shape[0]
    assert x.shape[1] == _F_IN, "generator expects [N, 2] inputs"
    w1e, b1e, w2e, w3e = _pack_params(params)

    tile, n_pad, grid_n = _choose_tile(n, max_tile_n)
    if n_pad != n:
        # Only hit for awkward multi-tile N; waste is bounded to <128 rows/tile.
        x = jnp.pad(x, ((0, n_pad - n), (0, 0)))

    def resident(shape):
        # Whole-array block + constant index map: DMA'd once, stays in VMEM.
        return pl.BlockSpec(shape, lambda i: (0, 0))

    flops = 2 * n_pad * (_F_IN * (_H1 + 1) + (_H1 + 1) * (_H2 + 1) + (_H2 + 1) * _F_OUT)
    bytes_accessed = 4 * (2 * _F_IN * n_pad                       # x in + out (8 B/row each)
                          + (_H1 + 1) * _F_IN + (_H1 + 1)
                          + (_H2 + 1) * (_H1 + 1) + _F_OUT * (_H2 + 1))

    out = pl.pallas_call(
        _make_kernel(tile),
        out_shape=jax.ShapeDtypeStruct((_F_OUT, n_pad), jnp.float32),
        grid=(grid_n,),
        in_specs=[
            pl.BlockSpec((tile, _F_IN), lambda i: (i, 0)),   # x tile (double-buffered)
            resident((_H1 + 1, _F_IN)),      # w1e
            resident((_H1 + 1, 1)),          # b1e
            resident((_H2 + 1, _H1 + 1)),    # w2e
            resident((_F_OUT, _H2 + 1)),     # w3e
        ],
        out_specs=pl.BlockSpec((_F_OUT, tile), lambda i: (0, i)),
        compiler_params=pltpu.CompilerParams(
            dimension_semantics=("parallel",),        # shard batch tiles across TCs (v7x)
            vmem_limit_bytes=32 * 1024 * 1024,        # ~8.6 MiB used at tile=8192 + headroom
        ),
        cost_estimate=pl.CostEstimate(
            flops=flops, transcendentals=0, bytes_accessed=bytes_accessed),
    )(x, w1e, b1e, w2e, w3e)

    if n_pad != n:
        out = out[:, :n]
    if feature_major_output:
        return out                   # [2, N] lane-dense, no extra layout pass
    # Interface-only layout pass to match nn.Module's [N, 2]; consumers that can
    # take feature-major data should pass feature_major_output=True instead.
    return out.T


def init_params(key):
    """PyTorch nn.Linear default init: U(+/- 1/sqrt(fan_in)), [out, in] weights."""
    def linear(key, fan_in, fan_out):
        kw, kb = jax.random.split(key)
        bound = 1.0 / (fan_in ** 0.5)
        w = jax.random.uniform(kw, (fan_out, fan_in), jnp.float32, -bound, bound)
        b = jax.random.uniform(kb, (fan_out,), jnp.float32, -bound, bound)
        return w, b

    k1, k2, k3 = jax.random.split(key, 3)
    w1, b1 = linear(k1, _F_IN, _H1)
    w2, b2 = linear(k2, _H1, _H2)
    w3, b3 = linear(k3, _H2, _F_OUT)
    return {"w1": w1, "b1": b1, "w2": w2, "b2": b2, "w3": w3, "b3": b3}


def reference_forward(x, p):
    h1 = jnp.maximum(x @ p["w1"].T + p["b1"], 0.0)
    h2 = jnp.maximum(h1 @ p["w2"].T + p["b2"], 0.0)
    return h2 @ p["w3"].T + p["b3"]


if __name__ == "__main__":
    key = jax.random.PRNGKey(0)
    kp, kx1, kx2, kx3 = jax.random.split(key, 4)
    params = init_params(kp)

    # Small batch: single exact block, no padding, no wrapper layout passes.
    x_small = jax.random.normal(kx1, (8, 2), dtype=jnp.float32)
    out_small = jax.block_until_ready(generator_forward(x_small, params))
    assert out_small.shape == (8, 2)
    assert jnp.allclose(out_small, reference_forward(x_small, params),
                        atol=1e-4, rtol=1e-4)

    # Multi-tile path: three exact 128-row tiles -> grid=(3,), resident weights,
    # "parallel" batch axis (v7x megacore).
    x_multi = jax.random.normal(kx2, (384, 2), dtype=jnp.float32)
    out_multi = jax.block_until_ready(
        generator_forward(x_multi, params, max_tile_n=128))
    assert out_multi.shape == (384, 2)
    assert jnp.allclose(out_multi, reference_forward(x_multi, params),
                        atol=1e-4, rtol=1e-4)

    # Awkward multi-tile batch: exercises the bounded-padding fallback + slice-back.
    x_rag = jax.random.normal(kx3, (300, 2), dtype=jnp.float32)
    out_rag = jax.block_until_ready(
        generator_forward(x_rag, params, max_tile_n=128))
    assert out_rag.shape == (300, 2)
    assert jnp.allclose(out_rag, reference_forward(x_rag, params),
                        atol=1e-4, rtol=1e-4)

    # Feature-major output path (skips the final layout transpose entirely).
    out_fm = jax.block_until_ready(
        generator_forward(x_small, params, feature_major_output=True))
    assert out_fm.shape == (2, 8)
    assert jnp.allclose(out_fm.T, out_small, atol=1e-6, rtol=1e-6)

    print("KERNEL_OK")
</pallas_src>

<mosaic_0001>
module attributes {stable_mosaic.version = 11 : i64} {
  func.func @kernel(%arg0: i32, %arg1: memref<8x2xf32, #tpu.memory_space<vmem>>, %arg2: memref<11x2xf32, #tpu.memory_space<vmem>>, %arg3: memref<11x1xf32, #tpu.memory_space<vmem>>, %arg4: memref<51x11xf32, #tpu.memory_space<vmem>>, %arg5: memref<2x51xf32, #tpu.memory_space<vmem>>, %arg6: memref<2x8xf32, #tpu.memory_space<vmem>>) attributes {dimension_semantics = [#tpu.dimension_semantics<parallel>], iteration_bounds = array<i64: 1>, scalar_prefetch = 0 : i64, scratch_operands = 0 : i64, tpu.core_type = #tpu.core_type<tc>, window_params = [{transform_indices = @transform_0, window_bounds = array<i64: 8, 2>}, {pipeline_mode = #tpu.pipeline_mode<synchronous>, transform_indices = @transform_1, window_bounds = array<i64: 11, 2>}, {pipeline_mode = #tpu.pipeline_mode<synchronous>, transform_indices = @transform_2, window_bounds = array<i64: 11, 1>}, {pipeline_mode = #tpu.pipeline_mode<synchronous>, transform_indices = @transform_3, window_bounds = array<i64: 51, 11>}, {pipeline_mode = #tpu.pipeline_mode<synchronous>, transform_indices = @transform_4, window_bounds = array<i64: 2, 51>}, {transform_indices = @transform_5, window_bounds = array<i64: 2, 8>}]} {
    %c0 = arith.constant 0 : index
    %c0_0 = arith.constant 0 : index
    %0 = vector.load %arg2[%c0, %c0_0] : memref<11x2xf32, #tpu.memory_space<vmem>>, vector<11x2xf32>
    %c0_1 = arith.constant 0 : index
    %c0_2 = arith.constant 0 : index
    %1 = vector.load %arg3[%c0_1, %c0_2] : memref<11x1xf32, #tpu.memory_space<vmem>>, vector<11x1xf32>
    %c0_3 = arith.constant 0 : index
    %c0_4 = arith.constant 0 : index
    %2 = vector.load %arg4[%c0_3, %c0_4] : memref<51x11xf32, #tpu.memory_space<vmem>>, vector<51x11xf32>
    %c0_5 = arith.constant 0 : index
    %c0_6 = arith.constant 0 : index
    %3 = vector.load %arg5[%c0_5, %c0_6] : memref<2x51xf32, #tpu.memory_space<vmem>>, vector<2x51xf32>
    %c0_7 = arith.constant 0 : index
    %c0_8 = arith.constant 0 : index
    %4 = vector.load %arg1[%c0_7, %c0_8] : memref<8x2xf32, #tpu.memory_space<vmem>>, vector<8x2xf32>
    %5 = tpu.transpose %4, [1, 0] : vector<8x2xf32> -> vector<2x8xf32>
    %cst = arith.constant dense<0.000000e+00> : vector<11x8xf32>
    %6 = tpu.matmul %0, %5, %cst {dimension_numbers = #tpu.dot_dimension_numbers<[1], [0], [0], [1], [0, 0, 1, 1], [], []>} : vector<11x2xf32>, vector<2x8xf32>, vector<11x8xf32> -> vector<11x8xf32>
    %7 = vector.broadcast %1 : vector<11x1xf32> to vector<11x8xf32>
    %8 = arith.addf %6, %7 : vector<11x8xf32>
    %cst_9 = arith.constant 0.000000e+00 : f32
    %9 = vector.broadcast %cst_9 : f32 to vector<11x8xf32>
    %10 = arith.maximumf %8, %9 : vector<11x8xf32>
    %cst_10 = arith.constant dense<0.000000e+00> : vector<51x8xf32>
    %11 = tpu.matmul %2, %10, %cst_10 {dimension_numbers = #tpu.dot_dimension_numbers<[1], [0], [0], [1], [0, 0, 1, 1], [], []>} : vector<51x11xf32>, vector<11x8xf32>, vector<51x8xf32> -> vector<51x8xf32>
    %cst_11 = arith.constant 0.000000e+00 : f32
    %12 = vector.broadcast %cst_11 : f32 to vector<51x8xf32>
    %13 = arith.maximumf %11, %12 : vector<51x8xf32>
    %cst_12 = arith.constant dense<0.000000e+00> : vector<2x8xf32>
    %14 = tpu.matmul %3, %13, %cst_12 {dimension_numbers = #tpu.dot_dimension_numbers<[1], [0], [0], [1], [0, 0, 1, 1], [], []>} : vector<2x51xf32>, vector<51x8xf32>, vector<2x8xf32> -> vector<2x8xf32>
    %c0_13 = arith.constant 0 : index
    %c0_14 = arith.constant 0 : index
    %15 = vector.load %arg6[%c0_13, %c0_14] : memref<2x8xf32, #tpu.memory_space<vmem>>, vector<2x8xf32>
    tpu.vector_store %arg6[%c0_13, %c0_14], %14 {strides = array<i32>} : memref<2x8xf32, #tpu.memory_space<vmem>>, vector<2x8xf32>,
    return
  }
  func.func @transform_0(%arg0: i32) -> (i32, i32) {
    %c0_i32 = arith.constant 0 : i32
    %c0_i32_0 = arith.constant 0 : i32
    return %arg0, %c0_i32 : i32, i32
  }
  func.func @transform_1(%arg0: i32) -> (i32, i32) {
    %c0_i32 = arith.constant 0 : i32
    %c0_i32_0 = arith.constant 0 : i32
    %c0_i32_1 = arith.constant 0 : i32
    return %c0_i32, %c0_i32_0 : i32, i32
  }
  func.func @transform_2(%arg0: i32) -> (i32, i32) {
    %c0_i32 = arith.constant 0 : i32
    %c0_i32_0 = arith.constant 0 : i32
    %c0_i32_1 = arith.constant 0 : i32
    return %c0_i32, %c0_i32_0 : i32, i32
  }
  func.func @transform_3(%arg0: i32) -> (i32, i32) {
    %c0_i32 = arith.constant 0 : i32
    %c0_i32_0 = arith.constant 0 : i32
    %c0_i32_1 = arith.constant 0 : i32
    return %c0_i32, %c0_i32_0 : i32, i32
  }
  func.func @transform_4(%arg0: i32) -> (i32, i32) {
    %c0_i32 = arith.constant 0 : i32
    %c0_i32_0 = arith.constant 0 : i32
    %c0_i32_1 = arith.constant 0 : i32
    return %c0_i32, %c0_i32_0 : i32, i32
  }
  func.func @transform_5(%arg0: i32) -> (i32, i32) {
    %c0_i32 = arith.constant 0 : i32
    %c0_i32_0 = arith.constant 0 : i32
    return %c0_i32, %arg0 : i32, i32
  }
}

</mosaic_0001>

<bundles_post_ra>
// kernel: tpu_custom_call.1
= control target key start
LH: loop header
LB: loop body
LE: loop exit
PB: predicated region body
PF: predicated region fallthrough
CT: control target
= control target key end

     0   :  { %vm44_vm0 = vcmask 15360   ;;  %s574_s0 = inlined_call_operand.vmem [shape: f32[8,2], index: 0, kind: input, shape index: {}]   ;;  %s575_s1 = inlined_call_operand.vmem [shape: f32[11,2], index: 1, kind: input, shape index: {}]   ;;  %s576_s2 = inlined_call_operand.vmem [shape: f32[11,1], index: 2, kind: input, shape index: {}]   ;;  %s577_s3 = inlined_call_operand.vmem [shape: f32[51,11], index: 3, kind: input, shape index: {}]   ;;  %s578_s4 = inlined_call_operand.vmem [shape: f32[2,51], index: 4, kind: input, shape index: {}]   ;;  %s579_s5 = inlined_call_operand.hbm [shape: f32[2,8], index: 5, kind: output, shape index: {}]  }
   0x1   :  { %v33_v0 = vld [vmem:[%s574_s0] sm:$0xff]  ;;  %v24_v2 = vld [vmem:[%s576_s2 + $0x8] sm:$0x7] }
   0x2   :  { %v21_v1 = vld [vmem:[%s575_s1] sm:$0xff]  ;;  %390 = vmatprep.subr.msk.mxu0 %vm44_vm0, %v33_v0 }
   0x3   :  { %392 = vmatprep.mubr.msk.f32.mxu0 %vm44_vm0, %v21_v1 }
   0x4   :  { %10 = vsyncpa [#allocation3], 0  ;;  %391 = vmatpush3.xpose.msk.msra.mxu0 %vm44_vm0, %v33_v0  ;;  %v22_v3 = vld [vmem:[%s575_s1 + $0x8] sm:$0x7]  ;;  %v464_v4 = vmov 0   ;;  %v23_v5 = vld [vmem:[%s576_s2] sm:$0xff] }
   0x5   :  { %441 = vset.pattern.permute.xlu0 %v464_v4  ;;  %v465_v6 = vmov 0.0   ;;  %vm466_vm1 = vmmov 0   ;;  %vm153_vm2 = vcmask 1042432   ;;  %v25_v15 = vld [vmem:[%s577_s3] sm:$0xff]  ;;  %vm131_vm3 = vcmask 89088   ;;  %v26_v16 = vld [vmem:[%s577_s3 + $0x8] sm:$0xff] }
   0x6   :  { %41 = vperm.xlu0 %441, %v24_v2   ;;  %395 = vmatprep.subr.mxu1 %v465_v6  ;;  %v27_v17 = vld [vmem:[%s577_s3 + $0x10] sm:$0xff]  ;;  %v28_v18 = vld [vmem:[%s577_s3 + $0x18] sm:$0xff]  ;;  %v29_v19 = vld [vmem:[%s577_s3 + $0x20] sm:$0xff]  ;;  %vm264_vm4 = vcmask 416768   ;;  %s467_s15 = smov [#allocation2]   ;;  %vm341_vm5 = vcmask 58368  }
   0x7   :  { %393 = vmatmul.mubr.msk.f32.vlgmr.msra.gmra.mxu0 %vm44_vm0, %v22_v3  ;;  %420 = vmatprep.subr.mxu0 %v465_v6  ;;  %v30_v20 = vld [vmem:[%s577_s3 + $0x28] sm:$0xff]  ;;  %v31_v21 = vld [vmem:[%s577_s3 + $0x30] sm:$0x7]  ;;  %v32_v43 = vld [vmem:[%s578_s4] sm:$0x3]  ;;  %s349_s16 = sshll.u32 %s467_s15, 4  ;;  %s350_s16 = int_to_ptr.vmem [resolvable:$true] %s349_s16 }
   0x8   :  { %399 = vmatprep.mubr.msk.f32.mxu1 %vm466_vm1, %v465_v6  ;;  %434 = vmatprep.mubr.msk.f32.mxu0 %vm466_vm1, %v465_v6  ;;  %s442_s17 = scalar_lea.vmem %s350_s16, 32  ;;  %p447_p1 = scmp.lt.s32.totalorder %s350_s16, %s350_s16 }
   0x9   :  { %p443_p0 = scmp.ne.s32.totalorder %s350_s16, %s442_s17  ;;  %p448_p2 = scmp.lt.s32.totalorder %s442_s17, %s442_s17 }
   0xa   :  { %36 = vperm.xlu0 %441, %v23_v5  }
   0xb   :  { %p449_p3 = por %p448_p2, %p447_p1 }
   0xd   :  { %p450_p4 = pnand %p449_p3, %p443_p0 }
  0x81   :  { %v42_v7 = vpop.permute.xlu0 %41 }
  0x85   :  { %v37_v10 = vpop.permute.xlu0 %36 }
  0xc7   :  { %v394_v8 = vpop.f32.mrf.mxu0 }
  0xc8   :  { %v126_v9 = vadd.f32 %v394_v8, %v42_v7 }
  0xc9   :  { %v120_v11 = vpop.f32.mrf.mxu0 }
  0xca   :  { %v130_v12 = vmax.f32 %v126_v9, 0.0  ;;  %v121_v13 = vadd.f32 %v120_v11, %v37_v10 }
  0xcc   :  { %v129_v14 = vmax.f32 %v121_v13, 0.0  ;;  %396 = vmatpush3.msk.msra.mxu1 %vm153_vm2, %v130_v12 }
  0xcd   :  { %397 = vmatprep.subr.mxu1 %v465_v6 }
  0xce   :  { %398 = vmatpush3.msra.mxu1 %v129_v14 }
  0xcf   :  { %400 = vmatmul.mubr.msk.f32.vlgmr.msra.gmra.mxu1 %vm131_vm3, %v25_v15 }
  0xd0   :  { %402 = vmatprep.mubr.msk.f32.mxu1 %vm466_vm1, %v465_v6 }
  0xd3   :  { %403 = vmatmul.mubr.msk.f32.gmra.mxu1 %vm131_vm3, %v26_v16 }
  0xd4   :  { %405 = vmatprep.mubr.msk.f32.mxu1 %vm466_vm1, %v465_v6 }
  0xd7   :  { %406 = vmatmul.mubr.msk.f32.gmra.mxu1 %vm131_vm3, %v27_v17 }
  0xd8   :  { %408 = vmatprep.mubr.msk.f32.mxu1 %vm466_vm1, %v465_v6 }
  0xdb   :  { %409 = vmatmul.mubr.msk.f32.gmra.mxu1 %vm131_vm3, %v28_v18 }
  0xdc   :  { %411 = vmatprep.mubr.msk.f32.mxu1 %vm466_vm1, %v465_v6 }
  0xdf   :  { %412 = vmatmul.mubr.msk.f32.gmra.mxu1 %vm131_vm3, %v29_v19 }
  0xe0   :  { %414 = vmatprep.mubr.msk.f32.mxu1 %vm466_vm1, %v465_v6 }
  0xe3   :  { %415 = vmatmul.mubr.msk.f32.gmra.mxu1 %vm131_vm3, %v30_v20 }
  0xe4   :  { %417 = vmatprep.mubr.msk.f32.mxu1 %vm466_vm1, %v465_v6 }
  0xe7   :  { %418 = vmatmul.mubr.msk.f32.gmra.mxu1 %vm131_vm3, %v31_v21 }
 0x18f   :  { %v223_v22 = vpop.f32.mrf.mxu1 }
 0x190   :  { %v257_v42 = vmax.f32 %v223_v22, 0.0 }
 0x191   :  { %v401_v23 = vpop.f32.mrf.mxu1 }
 0x193   :  { %v228_v24 = vpop.f32.mrf.mxu1 }
 0x194   :  { %v258_v41 = vmax.f32 %v228_v24, 0.0 }
 0x195   :  { %v404_v25 = vpop.f32.mrf.mxu1 }
 0x197   :  { %v233_v26 = vpop.f32.mrf.mxu1 }
 0x198   :  { %v259_v40 = vmax.f32 %v233_v26, 0.0 }
 0x199   :  { %v407_v27 = vpop.f32.mrf.mxu1 }
 0x19b   :  { %v238_v28 = vpop.f32.mrf.mxu1 }
 0x19c   :  { %v260_v39 = vmax.f32 %v238_v28, 0.0 }
 0x19d   :  { %v410_v29 = vpop.f32.mrf.mxu1 }
 0x19f   :  { %v243_v30 = vpop.f32.mrf.mxu1 }
 0x1a0   :  { %v261_v38 = vmax.f32 %v243_v30, 0.0 }
 0x1a1   :  { %v413_v31 = vpop.f32.mrf.mxu1 }
 0x1a3   :  { %v248_v32 = vpop.f32.mrf.mxu1 }
 0x1a4   :  { %v262_v37 = vmax.f32 %v248_v32, 0.0 }
 0x1a5   :  { %v416_v33 = vpop.f32.mrf.mxu1 }
 0x1a7   :  { %v253_v34 = vpop.f32.mrf.mxu1 }
 0x1a8   :  { %v263_v35 = vmax.f32 %v253_v34, 0.0 }
 0x1a9   :  { %v419_v36 = vpop.f32.mrf.mxu1 }
 0x1aa   :  { %421 = vmatpush3.msk.msra.mxu0 %vm153_vm2, %v263_v35 }
 0x1ab   :  { %422 = vmatprep.subr.mxu0 %v465_v6 }
 0x1ac   :  { %423 = vmatpush3.msra.mxu0 %v262_v37 }
 0x1ad   :  { %424 = vmatprep.subr.mxu0 %v465_v6 }
 0x1ae   :  { %425 = vmatpush3.msra.mxu0 %v261_v38 }
 0x1af   :  { %426 = vmatprep.subr.mxu0 %v465_v6 }
 0x1b0   :  { %427 = vmatpush3.msra.mxu0 %v260_v39 }
 0x1b1   :  { %428 = vmatprep.subr.mxu0 %v465_v6 }
 0x1b2   :  { %429 = vmatpush3.msra.mxu0 %v259_v40 }
 0x1b3   :  { %430 = vmatprep.subr.mxu0 %v465_v6 }
 0x1b4   :  { %431 = vmatpush3.msra.mxu0 %v258_v41 }
 0x1b5   :  { %432 = vmatprep.subr.mxu0 %v465_v6 }
 0x1b6   :  { %433 = vmatpush3.msra.mxu0 %v257_v42 }
 0x1b7   :  { %435 = vmatmul.mubr.msk.f32.vlgmr.msra.gmra.mxu0 %vm264_vm4, %v32_v43 }
 0x277   :  { %v337_v44 = vpop.f32.mrf.mxu0 }
 0x278   :  { %342 = vst.msk [vmem:[#allocation2] sm:$0x3] %vm341_vm5, %v337_v44 }
 0x279   :  { %v436_v45 = vpop.f32.mrf.mxu0 }
 0x27a   :  { %453 = shalt.err (!%p450_p4)
}
 0x27b   :  { %352 = dma.vmem_to_hbm [thread:$0]  %s350_s16, 32, %s579_s5, [#allocation3]  }
 0x27c   :  { %462 = dma.done.wait [#allocation3], 32  }
 0x27d   :  { %463 = vsyncadd [#allocation3], 4294967264 }
 0x27e   :  { %356 = vsyncpa [#allocation3], 1 }

</bundles_post_ra>
